<compile_context>
chip_gen: v6e
topology: v6e:2x2x1
jax: 0.10.0
libtpu: 0.0.40
codegen_flags: <defaults>
</compile_context>

<pallas_src>
import functools

import jax
import jax.numpy as jnp
import numpy as np
from jax.experimental import pallas as pl
from jax.experimental.pallas import tpu as pltpu


def _cdiv(a, b):
    return -(-a // b)


def _round_up(x, m):
    return _cdiv(x, m) * m


def _padded_tile_bytes(shape, itemsize):
    """VMEM bytes of a tile after (sublane, 128-lane) padding of the last 2 dims."""
    sublane = 8 * (4 // itemsize)          # 8 for f32, 16 for bf16
    dims = list(shape)
    dims[-1] = _round_up(dims[-1], 128)
    if len(dims) >= 2:
        dims[-2] = _round_up(dims[-2], sublane)
    n = 1
    for d in dims:
        n *= d
    return n * itemsize


def _vmem_capacity_bytes():
    try:
        cap = int(pltpu.get_tpu_info().vmem_capacity_bytes)
        if cap > 0:
            return cap
    except Exception:
        pass
    return 64 * 1024 * 1024    # v7x per-TC capacity: safe lower bound everywhere


def _vmem_step_bytes(th, tb, Lq, Lk, Dk, Dv, in_item, out_item):
    """Padded-size estimate of one grid step's VMEM working set."""
    blocks = 2 * (                                              # double-buffered I/O
        _padded_tile_bytes((tb, Lq, Lk), 2)                     # bf16 bias
        + _padded_tile_bytes((th, tb, Lq, Dk), in_item)         # q
        + _padded_tile_bytes((th, tb, Lk, Dk), in_item)         # k
        + _padded_tile_bytes((th, tb, Lk, Dv), in_item)         # v
        + _padded_tile_bytes((1, tb, Lq, th * Dv), out_item))   # o
    temps = (3 * _padded_tile_bytes((th, tb, Lq, Lk), 4)        # scores/exp/attn f32
             + _padded_tile_bytes((tb, Lq, th * Dv), 4))        # packed f32 output
    return blocks + temps


def _pick_tiles(H, B, Lq, Lk, Dk, Dv, in_item, out_item, budget_bytes):
    """(TH, TB): fewest grid steps (then least padded work) fitting the budget.
    Non-divisor tiles are allowed; the wrapper zero-pads H/B."""
    best_key, best = None, (1, 1)
    for th in range(1, min(H, 64) + 1):
        for tb in range(1, min(B, 64) + 1):
            if _vmem_step_bytes(th, tb, Lq, Lk, Dk, Dv, in_item, out_item) > budget_bytes:
                continue
            steps = _cdiv(H, th) * _cdiv(B, tb)
            padded_work = _cdiv(H, th) * th * _cdiv(B, tb) * tb
            key = (steps, padded_work, -(th * tb))
            if best_key is None or key < best_key:
                best_key, best = key, (th, tb)
    return best


def _sdpa_kernel(bias_ref, q_ref, k_ref, v_ref, o_ref, *, scale):
    # Block shapes:
    #   bias_ref: (TB, Lq, Lk) bf16        q_ref: (TH, TB, Lq, Dk)
    #   k_ref:    (TH, TB, Lk, Dk)         v_ref: (TH, TB, Lk, Dv)
    #   o_ref:    (1,  TB, Lq, TH*Dv)
    TH, TB, Lq, Dk = q_ref.shape
    Lk = k_ref.shape[2]
    Dv = v_ref.shape[3]

    q = q_ref[...]
    k = k_ref[...]
    v = v_ref[...]
    bias = bias_ref[...].astype(jnp.float32)           # (TB, Lq, Lk)

    # scores = q @ k^T: collapse (TH, TB) into one batch dim (free reshape —
    # last two dims untouched), contract Dk; bf16 x bf16 MXU, f32 accumulate.
    qb = q.reshape(TH * TB, Lq, Dk)
    kb = k.reshape(TH * TB, Lk, Dk)
    scores = jnp.einsum("bqd,bkd->bqk", qb, kb,
                        preferred_element_type=jnp.float32)
    scores = scores.reshape(TH, TB, Lq, Lk)

    # 1/temper applied to the f32 scores (trivial VPU work hidden under the MXU,
    # keeps full precision with bf16 operands), then the additive mask bias
    # (masked -> -1e10, else 0) broadcast over the head tile.
    scores = scores * jnp.float32(scale) + bias[None]

    # Numerically stable softmax over the key axis; denominator on the EUP.
    m = jnp.max(scores, axis=-1, keepdims=True)
    e = jnp.exp(scores - m)
    attn = e * pl.reciprocal(jnp.sum(e, axis=-1, keepdims=True), approx=True)
    attn = attn.astype(v.dtype)                         # bf16 for the fast MXU path

    # output = attn @ v, heads packed densely along lanes -> (TB, Lq, TH*Dv)
    # so the block is written with one wide store instead of TH narrow ones.
    outs = [
        jnp.einsum("bqk,bkd->bqd", attn[h], v[h],
                   preferred_element_type=jnp.float32)
        for h in range(TH)
    ]
    out = outs[0] if TH == 1 else jnp.concatenate(outs, axis=-1)
    o_ref[...] = out.astype(o_ref.dtype)[None]


def scaled_dot_product_attention(queries, keys, values, mask, *,
                                 hidden_dim, number_heads, one_scalar=1.0):
    BH, Lq, Dk = queries.shape
    _, Lk, Dv = values.shape
    H = number_heads
    B = BH // H
    assert BH == H * B
    assert keys.shape == (BH, Lk, Dk)
    assert mask.shape == (B, Lq, Lk)

    temper = float(np.power(hidden_dim, 0.5))
    scale = 1.0 / temper
    out_dtype = queries.dtype

    # bf16 operands (MXU-native on v5e/v6e/v7x, halves q/k/v DMA); the kernel
    # accumulates in f32 and stores the output in the original dtype.
    compute_dtype = (jnp.bfloat16
                     if jnp.dtype(queries.dtype).itemsize > 2 else queries.dtype)

    # inverted_mask = (-mask + one_scalar).byte(); fill wherever trunc != 0.
    # Precomputed ONCE per batch as an additive bf16 bias; the kernel re-reads
    # the same batch block for every head group (no per-head mask replication).
    inverted = jnp.trunc(jnp.float32(one_scalar) - mask.astype(jnp.float32)) != 0.0
    bias = jnp.where(inverted, jnp.float32(-(10.0 ** 10)),
                     jnp.float32(0.0)).astype(jnp.bfloat16)

    # Head-major (B*H) packing (torch repeat(H,1,1) convention): slab = h*B + b.
    q4 = queries.astype(compute_dtype).reshape(H, B, Lq, Dk)
    k4 = keys.astype(compute_dtype).reshape(H, B, Lk, Dk)
    v4 = values.astype(compute_dtype).reshape(H, B, Lk, Dv)

    in_item = jnp.dtype(compute_dtype).itemsize
    out_item = jnp.dtype(out_dtype).itemsize

    # Per-generation VMEM budget (128 MiB on v5e/v6e, 64 MiB on v7x) with
    # headroom, plus a matching scoped-VMEM limit for the compiler.
    vmem_cap = _vmem_capacity_bytes()
    budget = int(0.4 * vmem_cap)
    vmem_limit = max(32 * 1024 * 1024, int(0.75 * vmem_cap))

    TH, TB = _pick_tiles(H, B, Lq, Lk, Dk, Dv, in_item, out_item, budget)

    # cdiv handling: zero-pad heads / batches up to a multiple of the tile
    # (padded rows produce discarded outputs; bias=0 keeps them finite).
    Hp = _round_up(H, TH)
    Bp = _round_up(B, TB)
    if Hp != H or Bp != B:
        q4 = jnp.pad(q4, ((0, Hp - H), (0, Bp - B), (0, 0), (0, 0)))
        k4 = jnp.pad(k4, ((0, Hp - H), (0, Bp - B), (0, 0), (0, 0)))
        v4 = jnp.pad(v4, ((0, Hp - H), (0, Bp - B), (0, 0), (0, 0)))
        bias = jnp.pad(bias, ((0, Bp - B), (0, 0), (0, 0)))

    grid = (Bp // TB, Hp // TH)
    kernel = functools.partial(_sdpa_kernel, scale=scale)

    out_packed = pl.pallas_call(
        kernel,
        out_shape=jax.ShapeDtypeStruct((Hp // TH, Bp, Lq, TH * Dv), out_dtype),
        grid=grid,
        in_specs=[
            # Same batch bias block for every head group (keyed by b only),
            # so it stays resident across the fast hg axis.
            pl.BlockSpec((TB, Lq, Lk), lambda b, hg: (b, 0, 0)),
            pl.BlockSpec((TH, TB, Lq, Dk), lambda b, hg: (hg, b, 0, 0)),
            pl.BlockSpec((TH, TB, Lk, Dk), lambda b, hg: (hg, b, 0, 0)),
            pl.BlockSpec((TH, TB, Lk, Dv), lambda b, hg: (hg, b, 0, 0)),
        ],
        # Head-packed output block: last dim TH*Dv (denser stores than Dv-wide).
        out_specs=pl.BlockSpec((1, TB, Lq, TH * Dv), lambda b, hg: (hg, b, 0, 0)),
        compiler_params=pltpu.CompilerParams(
            dimension_semantics=("parallel", "parallel"),
            vmem_limit_bytes=vmem_limit),
    )(bias, q4, k4, v4)

    # Unpack (Hp//TH, Bp, Lq, TH*Dv) -> head-major torch.bmm layout (B*H, Lq, Dv).
    out = out_packed.reshape(Hp // TH, Bp, Lq, TH, Dv)
    out = jnp.transpose(out, (0, 3, 1, 2, 4)).reshape(Hp, Bp, Lq, Dv)
    return out[:H, :B].reshape(BH, Lq, Dv)


def _reference(queries, keys, values, mask, *, hidden_dim, number_heads,
               one_scalar=1.0):
    temper = float(np.power(hidden_dim, 0.5))
    attn = jnp.einsum("bqd,bkd->bqk", queries, keys) / temper
    rep_mask = jnp.tile(mask.astype(jnp.float32), (number_heads, 1, 1))
    rep_mask = jnp.broadcast_to(rep_mask, attn.shape)
    inverted = jnp.trunc(one_scalar - rep_mask) != 0.0
    attn = jnp.where(inverted, -(10.0 ** 10), attn)
    attn = jax.nn.softmax(attn, axis=2)
    return jnp.einsum("bqk,bkd->bqd", attn, values)


if __name__ == "__main__":
    # Module params (deterministic init): one_scalar = nn.Parameter(torch.ones(1)) == 1.0
    hidden_dim = 32
    number_heads = 2
    one_scalar = 1.0

    batch = 2
    seq_q = 8
    seq_k = 8
    d_head = hidden_dim // number_heads  # 16

    key = jax.random.PRNGKey(0)
    kq, kk, kv, km = jax.random.split(key, 4)

    queries = jax.random.normal(kq, (batch * number_heads, seq_q, d_head), jnp.float32)
    keys = jax.random.normal(kk, (batch * number_heads, seq_k, d_head), jnp.float32)
    values = jax.random.normal(kv, (batch * number_heads, seq_k, d_head), jnp.float32)

    # Binary mask (1 = keep, 0 = masked out); keep first key position always valid.
    mask = (jax.random.uniform(km, (batch, seq_q, seq_k)) > 0.3).astype(jnp.float32)
    mask = mask.at[:, :, 0].set(1.0)

    out = scaled_dot_product_attention(
        queries, keys, values, mask,
        hidden_dim=hidden_dim, number_heads=number_heads, one_scalar=one_scalar)
    out = jax.block_until_ready(out)

    ref = _reference(queries, keys, values, mask,
                     hidden_dim=hidden_dim, number_heads=number_heads,
                     one_scalar=one_scalar)
    # Tolerance reflects bf16 q/k/v/attn operands (f32 accumulation), the bf16
    # mask bias and the approx EUP reciprocal (~1% expected relative error).
    np.testing.assert_allclose(np.asarray(out), np.asarray(ref),
                               rtol=2e-2, atol=2e-2)

    print("KERNEL_OK")
</pallas_src>

<mosaic_0001>
module attributes {stable_mosaic.version = 11 : i64} {
  func.func @_sdpa_kernel(%arg0: i32, %arg1: i32, %arg2: memref<2x8x8xbf16, #tpu.memory_space<vmem>>, %arg3: memref<2x2x8x16xbf16, #tpu.memory_space<vmem>>, %arg4: memref<2x2x8x16xbf16, #tpu.memory_space<vmem>>, %arg5: memref<2x2x8x16xbf16, #tpu.memory_space<vmem>>, %arg6: memref<1x2x8x32xf32, #tpu.memory_space<vmem>>) attributes {dimension_semantics = [#tpu.dimension_semantics<parallel>, #tpu.dimension_semantics<parallel>], iteration_bounds = array<i64: 1, 1>, scalar_prefetch = 0 : i64, scratch_operands = 0 : i64, tpu.core_type = #tpu.core_type<tc>, window_params = [{transform_indices = @transform_0, window_bounds = array<i64: 2, 8, 8>}, {transform_indices = @transform_1, window_bounds = array<i64: 2, 2, 8, 16>}, {transform_indices = @transform_2, window_bounds = array<i64: 2, 2, 8, 16>}, {transform_indices = @transform_3, window_bounds = array<i64: 2, 2, 8, 16>}, {transform_indices = @transform_4, window_bounds = array<i64: 1, 2, 8, 32>}]} {
    %c0 = arith.constant 0 : index
    %c0_0 = arith.constant 0 : index
    %c0_1 = arith.constant 0 : index
    %c0_2 = arith.constant 0 : index
    %0 = vector.load %arg3[%c0, %c0_0, %c0_1, %c0_2] : memref<2x2x8x16xbf16, #tpu.memory_space<vmem>>, vector<2x2x8x16xbf16>
    %c0_3 = arith.constant 0 : index
    %c0_4 = arith.constant 0 : index
    %c0_5 = arith.constant 0 : index
    %c0_6 = arith.constant 0 : index
    %1 = vector.load %arg4[%c0_3, %c0_4, %c0_5, %c0_6] : memref<2x2x8x16xbf16, #tpu.memory_space<vmem>>, vector<2x2x8x16xbf16>
    %c0_7 = arith.constant 0 : index
    %c0_8 = arith.constant 0 : index
    %c0_9 = arith.constant 0 : index
    %c0_10 = arith.constant 0 : index
    %2 = vector.load %arg5[%c0_7, %c0_8, %c0_9, %c0_10] : memref<2x2x8x16xbf16, #tpu.memory_space<vmem>>, vector<2x2x8x16xbf16>
    %c0_11 = arith.constant 0 : index
    %c0_12 = arith.constant 0 : index
    %c0_13 = arith.constant 0 : index
    %3 = vector.load %arg2[%c0_11, %c0_12, %c0_13] : memref<2x8x8xbf16, #tpu.memory_space<vmem>>, vector<2x8x8xbf16>
    %4 = arith.extf %3 : vector<2x8x8xbf16> to vector<2x8x8xf32>
    %5 = vector.shape_cast %0 : vector<2x2x8x16xbf16> to vector<4x8x16xbf16>
    %6 = vector.shape_cast %1 : vector<2x2x8x16xbf16> to vector<4x8x16xbf16>
    "tpu.trace_start"() <{level = 10 : i32, message = "bqd,bkd->bqk"}> : () -> ()
    %cst = arith.constant dense<0.000000e+00> : vector<4x8x8xf32>
    %7 = tpu.matmul %5, %6, %cst {dimension_numbers = #tpu.dot_dimension_numbers<[2], [2], [1], [1], [0, 0, 0, 1, 1, 1], [0], [0]>} : vector<4x8x16xbf16>, vector<4x8x16xbf16>, vector<4x8x8xf32> -> vector<4x8x8xf32>
    "tpu.trace_stop"() : () -> ()
    %8 = vector.shape_cast %7 : vector<4x8x8xf32> to vector<2x2x8x8xf32>
    %cst_14 = arith.constant 0.176776692 : f32
    %9 = vector.broadcast %cst_14 : f32 to vector<2x2x8x8xf32>
    %10 = arith.mulf %8, %9 : vector<2x2x8x8xf32>
    %11 = vector.shape_cast %4 : vector<2x8x8xf32> to vector<1x2x8x8xf32>
    %12 = vector.broadcast %11 : vector<1x2x8x8xf32> to vector<2x2x8x8xf32>
    %13 = arith.addf %10, %12 : vector<2x2x8x8xf32>
    %cst_15 = arith.constant dense<0xFF800000> : vector<2x2x8xf32>
    %14 = vector.multi_reduction <maximumf>, %13, %cst_15 [3] : vector<2x2x8x8xf32> to vector<2x2x8xf32>
    %15 = vector.shape_cast %14 : vector<2x2x8xf32> to vector<2x2x8x1xf32>
    %16 = vector.broadcast %15 : vector<2x2x8x1xf32> to vector<2x2x8x8xf32>
    %17 = arith.subf %13, %16 : vector<2x2x8x8xf32>
    %18 = math.exp %17 : vector<2x2x8x8xf32>
    %cst_16 = arith.constant dense<0.000000e+00> : vector<2x2x8xf32>
    %19 = vector.multi_reduction <add>, %18, %cst_16 [3] : vector<2x2x8x8xf32> to vector<2x2x8xf32>
    %20 = vector.shape_cast %19 : vector<2x2x8xf32> to vector<2x2x8x1xf32>
    %21 = tpu.reciprocal %20 {approx = true} : vector<2x2x8x1xf32> -> vector<2x2x8x1xf32>
    %22 = vector.broadcast %21 : vector<2x2x8x1xf32> to vector<2x2x8x8xf32>
    %23 = arith.mulf %18, %22 : vector<2x2x8x8xf32>
    %24 = arith.truncf %23 : vector<2x2x8x8xf32> to vector<2x2x8x8xbf16>
    %25 = vector.extract_strided_slice %24 {offsets = [0, 0, 0, 0], sizes = [1, 2, 8, 8], strides = [1, 1, 1, 1]} : vector<2x2x8x8xbf16> to vector<1x2x8x8xbf16>
    %26 = vector.shape_cast %25 : vector<1x2x8x8xbf16> to vector<2x8x8xbf16>
    %27 = vector.extract_strided_slice %2 {offsets = [0, 0, 0, 0], sizes = [1, 2, 8, 16], strides = [1, 1, 1, 1]} : vector<2x2x8x16xbf16> to vector<1x2x8x16xbf16>
    %28 = vector.shape_cast %27 : vector<1x2x8x16xbf16> to vector<2x8x16xbf16>
    "tpu.trace_start"() <{level = 10 : i32, message = "bqk,bkd->bqd"}> : () -> ()
    %cst_17 = arith.constant dense<0.000000e+00> : vector<2x8x16xf32>
    %29 = tpu.matmul %26, %28, %cst_17 {dimension_numbers = #tpu.dot_dimension_numbers<[2], [1], [1], [2], [0, 0, 0, 1, 1, 2], [0], [0]>} : vector<2x8x8xbf16>, vector<2x8x16xbf16>, vector<2x8x16xf32> -> vector<2x8x16xf32>
    "tpu.trace_stop"() : () -> ()
    %30 = vector.extract_strided_slice %24 {offsets = [1, 0, 0, 0], sizes = [1, 2, 8, 8], strides = [1, 1, 1, 1]} : vector<2x2x8x8xbf16> to vector<1x2x8x8xbf16>
    %31 = vector.shape_cast %30 : vector<1x2x8x8xbf16> to vector<2x8x8xbf16>
    %32 = vector.extract_strided_slice %2 {offsets = [1, 0, 0, 0], sizes = [1, 2, 8, 16], strides = [1, 1, 1, 1]} : vector<2x2x8x16xbf16> to vector<1x2x8x16xbf16>
    %33 = vector.shape_cast %32 : vector<1x2x8x16xbf16> to vector<2x8x16xbf16>
    "tpu.trace_start"() <{level = 10 : i32, message = "bqk,bkd->bqd"}> : () -> ()
    %cst_18 = arith.constant dense<0.000000e+00> : vector<2x8x16xf32>
    %34 = tpu.matmul %31, %33, %cst_18 {dimension_numbers = #tpu.dot_dimension_numbers<[2], [1], [1], [2], [0, 0, 0, 1, 1, 2], [0], [0]>} : vector<2x8x8xbf16>, vector<2x8x16xbf16>, vector<2x8x16xf32> -> vector<2x8x16xf32>
    "tpu.trace_stop"() : () -> ()
    %35 = tpu.concatenate %29, %34 in 2 : vector<2x8x16xf32>, vector<2x8x16xf32> -> vector<2x8x32xf32>
    %36 = vector.shape_cast %35 : vector<2x8x32xf32> to vector<1x2x8x32xf32>
    %c0_19 = arith.constant 0 : index
    %c0_20 = arith.constant 0 : index
    %c0_21 = arith.constant 0 : index
    %c0_22 = arith.constant 0 : index
    %37 = vector.load %arg6[%c0_19, %c0_20, %c0_21, %c0_22] : memref<1x2x8x32xf32, #tpu.memory_space<vmem>>, vector<1x2x8x32xf32>
    tpu.vector_store %arg6[%c0_19, %c0_20, %c0_21, %c0_22], %36 {strides = array<i32>} : memref<1x2x8x32xf32, #tpu.memory_space<vmem>>, vector<1x2x8x32xf32>,
    return
  }
  func.func @transform_0(%arg0: i32, %arg1: i32) -> (i32, i32, i32) {
    %c0_i32 = arith.constant 0 : i32
    %c0_i32_0 = arith.constant 0 : i32
    %c0_i32_1 = arith.constant 0 : i32
    return %arg0, %c0_i32, %c0_i32_0 : i32, i32, i32
  }
  func.func @transform_1(%arg0: i32, %arg1: i32) -> (i32, i32, i32, i32) {
    %c0_i32 = arith.constant 0 : i32
    %c0_i32_0 = arith.constant 0 : i32
    %c0_i32_1 = arith.constant 0 : i32
    return %arg1, %arg0, %c0_i32, %c0_i32_0 : i32, i32, i32, i32
  }
  func.func @transform_2(%arg0: i32, %arg1: i32) -> (i32, i32, i32, i32) {
    %c0_i32 = arith.constant 0 : i32
    %c0_i32_0 = arith.constant 0 : i32
    %c0_i32_1 = arith.constant 0 : i32
    return %arg1, %arg0, %c0_i32, %c0_i32_0 : i32, i32, i32, i32
  }
  func.func @transform_3(%arg0: i32, %arg1: i32) -> (i32, i32, i32, i32) {
    %c0_i32 = arith.constant 0 : i32
    %c0_i32_0 = arith.constant 0 : i32
    %c0_i32_1 = arith.constant 0 : i32
    return %arg1, %arg0, %c0_i32, %c0_i32_0 : i32, i32, i32, i32
  }
  func.func @transform_4(%arg0: i32, %arg1: i32) -> (i32, i32, i32, i32) {
    %c0_i32 = arith.constant 0 : i32
    %c0_i32_0 = arith.constant 0 : i32
    %c0_i32_1 = arith.constant 0 : i32
    return %arg1, %arg0, %c0_i32, %c0_i32_0 : i32, i32, i32, i32
  }
}

</mosaic_0001>

<bundles_post_ra>
// kernel: tpu_custom_call.1
= control target key start
LH: loop header
LB: loop body
LE: loop exit
PB: predicated region body
PF: predicated region fallthrough
CT: control target
= control target key end

     0   :  { %9 = vsyncpa [#allocation3], 0  ;;  %s875_s0 = inlined_call_operand.hbm [shape: bf16[2,8,8], index: 0, kind: input, shape index: {}]   ;;  %s876_s1 = inlined_call_operand.hbm [shape: bf16[2,2,8,16], index: 1, kind: input, shape index: {}]   ;;  %s877_s2 = inlined_call_operand.hbm [shape: bf16[2,2,8,16], index: 2, kind: input, shape index: {}]   ;;  %s878_s3 = inlined_call_operand.hbm [shape: bf16[2,2,8,16], index: 3, kind: input, shape index: {}]   ;;  %s879_s4 = inlined_call_operand.hbm [shape: f32[1,2,8,32], index: 4, kind: output, shape index: {}]  }
   0x1   :  { %10 = vsyncpa [#allocation6], 0 }
   0x2   :  { %11 = vsyncpa [#allocation9], 0 }
   0x3   :  { %12 = vsyncpa [#allocation4], 0  ;;  %s761_s15 = smov [#allocation5]   ;;  %s762_s17 = smov [#allocation2]  }
   0x4   :  { %s30_s16 = sshll.u32 %s761_s15, 4  ;;  %s18_s18 = sshll.u32 %s762_s17, 4  ;;  %s31_s16 = int_to_ptr.vmem [resolvable:$true] %s30_s16  ;;  %s19_s18 = int_to_ptr.vmem [resolvable:$true] %s18_s18 }
   0x5   :  { %s661_s19 = scalar_lea.vmem %s31_s16, 256  ;;  %p666_p1 = scmp.lt.s32.totalorder %s31_s16, %s31_s16 }
   0x6   :  { %p662_p0 = scmp.ne.s32.totalorder %s31_s16, %s661_s19  ;;  %p667_p2 = scmp.lt.s32.totalorder %s661_s19, %s661_s19 }
   0x8   :  { %p668_p3 = por %p667_p2, %p666_p1 }
   0xa   :  { %p669_p4 = pnand %p668_p3, %p662_p0 }
   0xc   :  { %672 = shalt.err (!%p669_p4)
}
   0xd   :  { %s763_s20 = smov 64   ;;  %s764_s21 = smov 4  }
   0xe   :  { %36 = dma.hbm_to_vmem [thread:$0]  %s876_s1, 256, %s31_s16, [#allocation6], %s763_s20, %s763_s20, %s764_s21  }
   0xf   :  { %s681_s24 = scalar_lea.vmem %s19_s18, 128  ;;  %p686_p6 = scmp.lt.s32.totalorder %s19_s18, %s19_s18 }
  0x10   :  { %p682_p5 = scmp.ne.s32.totalorder %s19_s18, %s681_s24  ;;  %p687_p7 = scmp.lt.s32.totalorder %s681_s24, %s681_s24 }
  0x12   :  { %p688_p8 = por %p687_p7, %p686_p6 }
  0x14   :  { %p689_p9 = pnand %p688_p8, %p682_p5 }
  0x16   :  { %692 = shalt.err (!%p689_p9)
}
  0x17   :  { %24 = dma.hbm_to_vmem [thread:$0]  %s875_s0, 128, %s19_s18, [#allocation3], %s763_s20, %s763_s20, %s764_s21  }
  0x18   :  { %s765_s27 = smov [#allocation7]   ;;  %s766_s29 = smov [#allocation8]  }
  0x19   :  { %s42_s28 = sshll.u32 %s765_s27, 4  ;;  %s54_s30 = sshll.u32 %s766_s29, 4  ;;  %s43_s28 = int_to_ptr.vmem [resolvable:$true] %s42_s28  ;;  %s55_s30 = int_to_ptr.vmem [resolvable:$true] %s54_s30 }
  0x1a   :  { %s701_s1 = scalar_lea.vmem %s43_s28, 256  ;;  %p706_p11 = scmp.lt.s32.totalorder %s43_s28, %s43_s28 }
  0x1b   :  { %p702_p10 = scmp.ne.s32.totalorder %s43_s28, %s701_s1  ;;  %p707_p12 = scmp.lt.s32.totalorder %s701_s1, %s701_s1 }
  0x1d   :  { %p708_p13 = por %p707_p12, %p706_p11 }
  0x1f   :  { %p709_p0 = pnand %p708_p13, %p702_p10 }
  0x21   :  { %712 = shalt.err (!%p709_p0)
}
  0x22   :  { %48 = dma.hbm_to_vmem [thread:$0]  %s877_s2, 256, %s43_s28, [#allocation6], %s763_s20, %s763_s20, %s764_s21  }
  0x23   :  { %s721_s0 = scalar_lea.vmem %s55_s30, 256  ;;  %p726_p2 = scmp.lt.s32.totalorder %s55_s30, %s55_s30 }
  0x24   :  { %p722_p1 = scmp.ne.s32.totalorder %s55_s30, %s721_s0  ;;  %p727_p3 = scmp.lt.s32.totalorder %s721_s0, %s721_s0 }
  0x26   :  { %p728_p4 = por %p727_p3, %p726_p2 }
  0x28   :  { %p729_p5 = pnand %p728_p4, %p722_p1 }
  0x2a   :  { %732 = shalt.err (!%p729_p5)
}
  0x2b   :  { %60 = dma.hbm_to_vmem [thread:$0]  %s878_s3, 256, %s55_s30, [#allocation9], %s763_s20, %s763_s20, %s764_s21  }
  0x2c   :  { %753 = dma.done.wait [#allocation3], 128  }
  0x2d   :  { %754 = vsyncadd [#allocation3], 4294967168 }
  0x2e   :  { %755 = dma.done.wait [#allocation6], 512  }
  0x2f   :  { %756 = vsyncadd [#allocation6], 4294966784 }
  0x30   :  { %757 = dma.done.wait [#allocation9], 256  }
  0x31   :  { %758 = vsyncadd [#allocation9], 4294967040  ;;  %v767_v0 = vmov 0.0   ;;  %vm768_vm0 = vmmov 0   ;;  %vm90_vm1 = vcmask 130048   ;;  %v558_v13 = vld [vmem:[#allocation2] sm:$0xff]  }
  0x32   :  { %577 = vmatprep.subr.bf16.mxu0 %v767_v0  ;;  %583 = vmatprep.subr.bf16.mxu1 %v767_v0  ;;  %v78_v1 = vld [vmem:[#allocation7] sm:$0xf]  ;;  %v79_v2 = vld [vmem:[#allocation7 + $0x4] sm:$0xf]  ;;  %v80_v5 = vld [vmem:[#allocation7 + $0x8] sm:$0xf]  ;;  %v559_v14 = vunpack.c.l.bf16 %v558_v13  ;;  %v560_v15 = vunpack.c.h.bf16 %v558_v13 }
  0x33   :  { %579 = vmatprep.mubr.msk.bf16.mxu0 %vm768_vm0, %v767_v0  ;;  %585 = vmatprep.mubr.msk.bf16.mxu1 %vm768_vm0, %v767_v0  ;;  %v95_v3 = vsel %vm90_vm1, %v78_v1, 0  ;;  %v141_v4 = vsel %vm90_vm1, %v79_v2, 0  ;;  %v81_v6 = vld [vmem:[#allocation7 + $0xc] sm:$0xf]  ;;  %v74_v7 = vld [vmem:[#allocation5] sm:$0xf] }
  0x34   :  { %578 = vmatpush3.bf16.xpose.msra.mxu0 %v95_v3  ;;  %584 = vmatpush3.bf16.xpose.msra.mxu1 %v141_v4  ;;  %v75_v8 = vld [vmem:[#allocation5 + $0x4] sm:$0xf]  ;;  %v187_v9 = vsel %vm90_vm1, %v80_v5, 0  ;;  %v233_v10 = vsel %vm90_vm1, %v81_v6, 0  ;;  %v76_v11 = vld [vmem:[#allocation5 + $0x8] sm:$0xf] }
  0x35   :  { %589 = vmatprep.subr.bf16.mxu0 %v767_v0  ;;  %595 = vmatprep.subr.bf16.mxu1 %v767_v0  ;;  %v77_v12 = vld [vmem:[#allocation5 + $0xc] sm:$0xf]  ;;  %vm283_vm2 = vcmask 64512   ;;  %v82_v1 = vld [vmem:[#allocation8] sm:$0xf]  ;;  %vm335_vm3 = vcmask 1043456  }
  0x36   :  { %v83_v2 = vld [vmem:[#allocation8 + $0x4] sm:$0xf]  ;;  %v337_v3 = vsel %vm335_vm3, %v82_v1, 0  ;;  %s769_s2 = smov 16   ;;  %vm527_vm4 = vcmask 261120   ;;  %s770_s3 = smov [#allocation10]  }
  0x37   :  { %v383_v4 = vsel %vm335_vm3, %v83_v2, 0  ;;  %s535_s9 = sshll.u32 %s770_s3, 4  ;;  %s536_s9 = int_to_ptr.vmem [resolvable:$true] %s535_s9 }
  0x38   :  { %s733_s10 = scalar_lea.vmem %s536_s9, 256  ;;  %p738_p7 = scmp.lt.s32.totalorder %s536_s9, %s536_s9 }
  0x39   :  { %p734_p6 = scmp.ne.s32.totalorder %s536_s9, %s733_s10  ;;  %p739_p8 = scmp.lt.s32.totalorder %s733_s10, %s733_s10 }
  0x3b   :  { %580 = vmatmul.mubr.msk.bf16.vlgmr.msra.gmra.mxu0 %vm90_vm1, %v74_v7  ;;  %586 = vmatmul.mubr.msk.bf16.vlgmr.msra.gmra.mxu1 %vm90_vm1, %v75_v8  ;;  %p740_p9 = por %p739_p8, %p738_p7 }
  0x3c   :  { %590 = vmatpush3.bf16.xpose.msra.mxu0 %v187_v9  ;;  %596 = vmatpush3.bf16.xpose.msra.mxu1 %v233_v10  ;;  %v84_v10 = vld [vmem:[#allocation8 + $0x8] sm:$0xf] }
  0x3d   :  { %591 = vmatprep.mubr.msk.bf16.mxu0 %vm768_vm0, %v767_v0  ;;  %597 = vmatprep.mubr.msk.bf16.mxu1 %vm768_vm0, %v767_v0  ;;  %v429_v13 = vsel %vm335_vm3, %v84_v10, 0  ;;  %p741_p10 = pnand %p740_p9, %p734_p6 }
  0x3e   :  { %601 = vmatprep.subr.bf16.mxu0 %v767_v0  ;;  %607 = vmatprep.subr.bf16.mxu1 %v767_v0 }
  0x43   :  { %592 = vmatmul.mubr.msk.bf16.vlgmr.msra.gmra.mxu0 %vm90_vm1, %v76_v11  ;;  %598 = vmatmul.mubr.msk.bf16.vlgmr.msra.gmra.mxu1 %vm90_vm1, %v77_v12 }
  0x44   :  { %603 = vmatprep.mubr.msk.bf16.mxu0 %vm768_vm0, %v767_v0  ;;  %609 = vmatprep.mubr.msk.bf16.mxu1 %vm768_vm0, %v767_v0 }
  0x45   :  { %602 = vmatpush3.bf16.msra.mxu0 %v337_v3  ;;  %608 = vmatpush3.bf16.msra.mxu1 %v383_v4 }
  0x46   :  { %613 = vmatprep.subr.bf16.mxu0 %v767_v0  ;;  %619 = vmatprep.subr.bf16.mxu1 %v767_v0 }
  0xfb   :  { %v131_v16 = vpop.f32.mrf.mxu0  ;;  %v177_v17 = vpop.f32.mrf.mxu1 }
  0xfc   :  { %v275_v18 = vmul.f32 0.17677669, %v131_v16  ;;  %v276_v19 = vmul.f32 0.17677669, %v177_v17 }
  0xfd   :  { %v581_v20 = vpop.f32.mrf.mxu0  ;;  %v587_v21 = vpop.f32.mrf.mxu1 }
  0xfe   :  { %v279_v22 = vadd.f32 %v559_v14, %v275_v18  ;;  %v280_v23 = vadd.f32 %v560_v15, %v276_v19 }
  0xff   :  { %v134_v24 = vpop.f32.mrf.mxu0  ;;  %v180_v25 = vpop.f32.mrf.mxu1 }
 0x100   :  { %v284_v26 = vsel %vm283_vm2, %v279_v22, -inf  ;;  %v287_v29 = vsel %vm283_vm2, %v280_v23, -inf }
 0x101   :  { %v588_v27 = vpop.f32.mrf.mxu1  ;;  %285 = vmax.xlane.f32.xlu0 %v284_v26  ;;  %v582_v28 = vpop.f32.mrf.mxu0 }
 0x103   :  { %v223_v30 = vpop.f32.mrf.mxu0  ;;  %v269_v31 = vpop.f32.mrf.mxu1 }
 0x104   :  { %v277_v32 = vmul.f32 0.17677669, %v223_v30  ;;  %v278_v33 = vmul.f32 0.17677669, %v269_v31 }
 0x105   :  { %v599_v34 = vpop.f32.mrf.mxu1  ;;  %288 = vmax.xlane.f32.xlu0 %v287_v29  ;;  %v593_v35 = vpop.f32.mrf.mxu0 }
 0x106   :  { %v281_v36 = vadd.f32 %v559_v14, %v277_v32  ;;  %v282_v37 = vadd.f32 %v560_v15, %v278_v33  ;;  %v85_v15 = vld [vmem:[#allocation8 + $0xc] sm:$0xf] }
 0x107   :  { %v226_v38 = vpop.f32.mrf.mxu0  ;;  %v272_v39 = vpop.f32.mrf.mxu1  ;;  %v475_v18 = vsel %vm335_vm3, %v85_v15, 0 }
 0x108   :  { %v290_v40 = vsel %vm283_vm2, %v281_v36, -inf  ;;  %v293_v43 = vsel %vm283_vm2, %v282_v37, -inf }
 0x109   :  { %v600_v41 = vpop.f32.mrf.mxu1  ;;  %291 = vmax.xlane.f32.xlu1 %v290_v40  ;;  %v594_v42 = vpop.f32.mrf.mxu0 }
 0x10d   :  { %294 = vmax.xlane.f32.xlu1 %v293_v43 }
 0x18a   :  { %v286_v44 = vpop.xlane.xlu0 %285 }
 0x18b   :  { %v296_v45 = vsub.f32 %v279_v22, %v286_v44 }
 0x18d   :  { %v300_v46 = vmul.f32 1.442695, %v296_v45 }
 0x18e   :  { %v289_v47 = vpop.xlane.xlu0 %288 }
 0x18f   :  { %637 = vpow2.f32 %v300_v46  ;;  %v297_v48 = vsub.f32 %v280_v23, %v289_v47 }
 0x191   :  { %v302_v49 = vmul.f32 1.442695, %v297_v48 }
 0x192   :  { %v292_v50 = vpop.xlane.xlu1 %291 }
 0x193   :  { %639 = vpow2.f32 %v302_v49  ;;  %v298_v51 = vsub.f32 %v281_v36, %v292_v50 }
 0x195   :  { %v304_v52 = vmul.f32 1.442695, %v298_v51 }
 0x196   :  { %v295_v53 = vpop.xlane.xlu1 %294 }
 0x197   :  { %641 = vpow2.f32 %v304_v52  ;;  %v299_v54 = vsub.f32 %v282_v37, %v295_v53 }
 0x199   :  { %v306_v55 = vmul.f32 1.442695, %v299_v54 }
 0x19b   :  { %643 = vpow2.f32 %v306_v55 }
 0x19c   :  { %v638_v56 = vpop.eup %637 }
 0x19d   :  { %v308_v57 = vsel %vm283_vm2, %v638_v56, 0.0 }
 0x19e   :  { %309 = vadd.xlane.f32.xlu0 %v308_v57 }
 0x1a0   :  { %v640_v58 = vpop.eup %639 }
 0x1a1   :  { %v311_v59 = vsel %vm283_vm2, %v640_v58, 0.0 }
 0x1a2   :  { %312 = vadd.xlane.f32.xlu1 %v311_v59 }
 0x1a4   :  { %v642_v60 = vpop.eup %641 }
 0x1a5   :  { %v314_v61 = vsel %vm283_vm2, %v642_v60, 0.0 }
 0x1a6   :  { %315 = vadd.xlane.f32.xlu0 %v314_v61 }
 0x1a8   :  { %v644_v62 = vpop.eup %643 }
 0x1a9   :  { %v317_v63 = vsel %vm283_vm2, %v644_v62, 0.0 }
 0x1aa   :  { %318 = vadd.xlane.f32.xlu1 %v317_v63 }
 0x227   :  { %v310_v5 = vpop.xlane.xlu0 %309 }
 0x228   :  { %645 = vrcp.f32 %v310_v5 }
 0x22b   :  { %v313_v6 = vpop.xlane.xlu1 %312 }
 0x22c   :  { %647 = vrcp.f32 %v313_v6 }
 0x22f   :  { %v316_v7 = vpop.xlane.xlu0 %315 }
 0x230   :  { %649 = vrcp.f32 %v316_v7 }
 0x233   :  { %v319_v8 = vpop.xlane.xlu1 %318 }
 0x234   :  { %651 = vrcp.f32 %v319_v8 }
 0x235   :  { %v646_v9 = vpop.eup %645 }
 0x236   :  { %v324_v11 = vmul.f32 %v646_v9, %v638_v56 }
 0x238   :  { %v328_v12 = vpack.c.bf16 %v324_v11, %v324_v11 }
 0x239   :  { %v648_v14 = vpop.eup %647 }
 0x23a   :  { %604 = vmatmul.mubr.msk.bf16.vlgmr.msra.gmra.mxu0 %vm283_vm2, %v328_v12  ;;  %v325_v16 = vmul.f32 %v648_v14, %v640_v58 }
 0x23b   :  { %614 = vmatpush3.bf16.msra.mxu0 %v429_v13  ;;  %615 = vmatprep.mubr.msk.bf16.mxu0 %vm768_vm0, %v767_v0 }
 0x23c   :  { %v329_v17 = vpack.c.bf16 %v325_v16, %v325_v16 }
 0x23d   :  { %v650_v19 = vpop.eup %649 }
 0x23e   :  { %610 = vmatmul.mubr.msk.bf16.vlgmr.msra.gmra.mxu1 %vm283_vm2, %v329_v17  ;;  %v326_v20 = vmul.f32 %v650_v19, %v642_v60 }
 0x23f   :  { %620 = vmatpush3.bf16.msra.mxu1 %v475_v18  ;;  %621 = vmatprep.mubr.msk.bf16.mxu1 %vm768_vm0, %v767_v0 }
 0x240   :  { %v330_v21 = vpack.c.bf16 %v326_v20, %v326_v20 }
 0x241   :  { %v652_v22 = vpop.eup %651 }
 0x242   :  { %616 = vmatmul.mubr.msk.bf16.vlgmr.msra.gmra.mxu0 %vm283_vm2, %v330_v21  ;;  %v327_v23 = vmul.f32 %v652_v22, %v644_v62 }
 0x244   :  { %v331_v24 = vpack.c.bf16 %v327_v23, %v327_v23 }
 0x246   :  { %622 = vmatmul.mubr.msk.bf16.vlgmr.msra.gmra.mxu1 %vm283_vm2, %v331_v24 }
 0x2fa   :  { %v373_v25 = vpop.f32.mrf.mxu0 }
 0x2fc   :  { %v605_v26 = vpop.f32.mrf.mxu0 }
 0x2fe   :  { %v376_v27 = vpop.f32.mrf.mxu0  ;;  %v419_v28 = vpop.f32.mrf.mxu1 }
 0x300   :  { %v606_v29 = vpop.f32.mrf.mxu0  ;;  %v611_v30 = vpop.f32.mrf.mxu1 }
 0x302   :  { %v422_v31 = vpop.f32.mrf.mxu1  ;;  %v465_v32 = vpop.f32.mrf.mxu0 }
 0x303   :  { %519 = vrot.lane.b32.xlu0 %v465_v32, %s769_s2 }
 0x304   :  { %v612_v33 = vpop.f32.mrf.mxu1  ;;  %v617_v0 = vpop.f32.mrf.mxu0 }
 0x306   :  { %v468_v34 = vpop.f32.mrf.mxu0  ;;  %v511_v35 = vpop.f32.mrf.mxu1 }
 0x307   :  { %521 = vrot.lane.b32.xlu1 %v511_v35, %s769_s2 }
 0x308   :  { %v618_v36 = vpop.f32.mrf.mxu0  ;;  %v623_v37 = vpop.f32.mrf.mxu1 }
 0x30a   :  { %v514_v38 = vpop.f32.mrf.mxu1 }
 0x30c   :  { %v624_v39 = vpop.f32.mrf.mxu1 }
 0x375   :  { %v520_v40 = vpop.permute.xlu0 %519 }
 0x376   :  { %v525_v41 = vsel %vm90_vm1, %v373_v25, %v520_v40 }
 0x377   :  { %528 = vst.msk [vmem:[#allocation10] sm:$0xff] %vm527_vm4, %v525_v41 }
 0x379   :  { %v522_v42 = vpop.permute.xlu1 %521 }
 0x37a   :  { %v526_v43 = vsel %vm90_vm1, %v419_v28, %v522_v42 }
 0x37b   :  { %529 = vst.msk [vmem:[#allocation10 + $0x8] sm:$0xff] %vm527_vm4, %v526_v43 }
 0x37c   :  { %744 = shalt.err (!%p741_p10)
}
 0x37d   :  { %s771_s11 = smov 128   ;;  %s772_s12 = smov 8  }
 0x37e   :  { %541 = dma.vmem_to_hbm [thread:$0]  %s536_s9, 256, %s879_s4, [#allocation4], %s771_s11, %s771_s11, %s772_s12  }
 0x37f   :  { %759 = dma.done.wait [#allocation4], 256  }
 0x380   :  { %760 = vsyncadd [#allocation4], 4294967040 }
 0x381   :  { %545 = vsyncpa [#allocation3], 1 }
 0x382   :  { %546 = vsyncpa [#allocation6], 1 }
 0x383   :  { %547 = vsyncpa [#allocation9], 1 }
 0x384   :  { %548 = vsyncpa [#allocation4], 1 }

</bundles_post_ra>
